<compile_context>
chip_gen: v7x
topology: tpu7x:2x2x1
jax: 0.10.0
libtpu: 0.0.40
codegen_flags: <defaults>
</compile_context>

<pallas_src>
import functools
import math

import jax
import jax.numpy as jnp
from jax import lax
from jax.experimental import pallas as pl
from jax.experimental.pallas import tpu as pltpu


NEG_INF = -1e30  # safe for f32 score dtype


@functools.lru_cache(maxsize=None)
def _vmem_limit_bytes():
    """Generation-aware VMEM budget: ~75% of physical VMEM (v5e/v6e 128 MiB -> 96 MiB, v7x 64 -> 48)."""
    try:
        return int(pltpu.get_tpu_info().vmem_capacity_bytes * 3 // 4)
    except Exception:
        return 48 * 1024 * 1024


def _pick_tile(n, target, step=8):
    """Largest tile <= target that divides n and is a multiple of `step` (or n itself if n <= target)."""
    if n <= target:
        return n
    start = (target // step) * step
    for t in range(start, step - 1, -step):
        if n % t == 0:
            return t
    return n


# ----------------------------------------------------------------------------- kernels

def _attn_block_kernel(x_ref, rmsw_ref, wq_ref, wv_ref, cos_ref, sin_ref,
                       o_ref, acc_ref, *, n_heads, scale, eps):
    """Fused RMSNorm -> Q/V proj -> RoPE -> causal SDPA (K == Q) -> +x residual for one batch.

    All intermediates (normalized activations, Q/K/V, per-head scores) live only in VMEM/vregs.
    TODO(synk): add a query-tile grid axis + kv-blocked online softmax (flash style) for long
    sequences and better v7x megacore utilization; the toy S makes full (S,S) scores trivial.
    """
    S, D = x_ref.shape[1], x_ref.shape[2]
    dh = D // n_heads
    half = D // 2

    # RMSNorm (f32 stats) -> bf16 activations for the MXU.
    x = x_ref[0].astype(jnp.float32)                                        # (S, D)
    var = jnp.mean(x * x, axis=-1, keepdims=True)
    xn = (x * lax.rsqrt(var + eps) * rmsw_ref[...].astype(jnp.float32)).astype(wq_ref.dtype)

    # Projections: bf16 x bf16 -> f32 accumulate.
    q = jnp.dot(xn, wq_ref[...], preferred_element_type=jnp.float32)        # (S, D) f32
    v = jnp.dot(xn, wv_ref[...], preferred_element_type=jnp.float32).astype(jnp.bfloat16)

    # RoPE on the full hidden dim (pre-head-split, as in the PyTorch source).
    # The rotate_half sign is pre-folded into sin_ref (first D/2 columns negated on the host),
    # so this is just a half-swap plus two FMAs.
    rot = jnp.concatenate([q[:, half:], q[:, :half]], axis=-1)
    q = q * cos_ref[...] + rot * sin_ref[...]

    k = q.astype(jnp.bfloat16)                  # K == Q (reproduces xk = self.query(x))
    qs = (q * scale).astype(jnp.bfloat16)       # 1/sqrt(dh) folded into ONE operand only (K==Q!)

    row = lax.broadcasted_iota(jnp.int32, (S, S), 0)
    col = lax.broadcasted_iota(jnp.int32, (S, S), 1)
    causal = col <= row

    # Per-head SDPA.  Static unroll is fine for small H; heads write disjoint lane slices of a
    # VMEM scratch so the HBM store below stays one lane-dense (S, D) slab.
    # TODO(synk): for large H / S switch to lax.fori_loop over head-sliced VMEM refs to bound
    # vreg live ranges.
    for h in range(n_heads):
        sl = slice(h * dh, (h + 1) * dh)
        s = lax.dot_general(qs[:, sl], k[:, sl],
                            dimension_numbers=(((1,), (1,)), ((), ())),     # q @ k^T, no transpose op
                            preferred_element_type=jnp.float32)             # (S, S) f32
        s = jnp.where(causal, s, NEG_INF)
        m = jnp.max(s, axis=-1, keepdims=True)
        p = jnp.exp(s - m)
        inv_l = 1.0 / jnp.sum(p, axis=-1, keepdims=True)                    # (S, 1) divide once
        p = (p * inv_l).astype(jnp.bfloat16)                                # bf16 into the MXU
        acc_ref[:, sl] = jnp.dot(p, v[:, sl], preferred_element_type=jnp.float32)

    # Fused first residual; single lane-dense (S, D) store; residual stream carried in bf16.
    o_ref[0] = (x + acc_ref[...]).astype(o_ref.dtype)


def _mlp_block_kernel(h_ref, rmsw_ref, w1_ref, w3_ref, w2_ref, o_ref,
                      hn_ref, acc_ref, *, eps):
    """Fused RMSNorm -> SwiGLU(w1, w3) -> w2 -> +residual, tiled (rows x hidden).

    Grid = (M // tm, Hd // tn) with the hidden axis as an 'arbitrary' reduction axis and a
    resident f32 accumulator, so arbitrarily large hidden_dim never needs all of w1/w3/w2
    in VMEM at once (fits v7x's 64 MiB).  The normalized activations are computed once per
    row tile and cached in a VMEM scratch.
    """
    j = pl.program_id(1)

    @pl.when(j == 0)
    def _():
        h = h_ref[...].astype(jnp.float32)
        var = jnp.mean(h * h, axis=-1, keepdims=True)
        hn_ref[...] = (h * lax.rsqrt(var + eps)
                       * rmsw_ref[...].astype(jnp.float32)).astype(hn_ref.dtype)
        acc_ref[...] = jnp.zeros_like(acc_ref)

    hn = hn_ref[...]                                                         # (tm, D) bf16
    a = jnp.dot(hn, w1_ref[...], preferred_element_type=jnp.float32)         # (tm, tn)
    b = jnp.dot(hn, w3_ref[...], preferred_element_type=jnp.float32)         # (tm, tn)
    g = (a * jax.nn.sigmoid(a) * b).astype(w2_ref.dtype)                     # silu(a) * b -> bf16
    acc_ref[...] += jnp.dot(g, w2_ref[...], preferred_element_type=jnp.float32)

    @pl.when(j == pl.num_programs(1) - 1)
    def _():
        o_ref[...] = (h_ref[...].astype(jnp.float32) + acc_ref[...]).astype(o_ref.dtype)


# ----------------------------------------------------------------------------- wrappers

def attention_block(x, rms_w, wq, wv, cos, sin_rot, *, n_heads, eps=1e-6):
    """x: (B, S, D) f32 -> bf16 residual stream  x + MHA(RMSNorm(x))  per batch element."""
    B, S, D = x.shape
    scale = 1.0 / math.sqrt(D // n_heads)

    act_spec = pl.BlockSpec((1, S, D), lambda b: (b, 0, 0))
    rms_spec = pl.BlockSpec((1, D), lambda b: (0, 0))
    w_spec = pl.BlockSpec((D, D), lambda b: (0, 0))       # constant index -> resident across batches
    rope_spec = pl.BlockSpec((S, D), lambda b: (0, 0))    # constant index -> fetched once

    return pl.pallas_call(
        functools.partial(_attn_block_kernel, n_heads=n_heads, scale=scale, eps=eps),
        out_shape=jax.ShapeDtypeStruct((B, S, D), jnp.bfloat16),
        grid_spec=pltpu.PrefetchScalarGridSpec(
            num_scalar_prefetch=0,
            grid=(B,),
            in_specs=[act_spec, rms_spec, w_spec, w_spec, rope_spec, rope_spec],
            out_specs=act_spec,
            scratch_shapes=[pltpu.VMEM((S, D), jnp.float32)]),
        compiler_params=pltpu.CompilerParams(
            dimension_semantics=("parallel",),
            vmem_limit_bytes=_vmem_limit_bytes()),
    )(x, rms_w.reshape(1, D), wq, wv, cos, sin_rot)


def mlp_block(h, rms_w, w1, w3, w2, *, eps=1e-6, row_tile=256, hidden_tile=512):
    """h: (M, D) bf16 -> f32  h + w2( silu(w1(rms(h))) * w3(rms(h)) ), (rows x hidden)-tiled."""
    M, D = h.shape
    Hd = w1.shape[1]
    tm = _pick_tile(M, row_tile, step=16 if h.dtype == jnp.bfloat16 else 8)  # bf16 packs 2 rows/sublane
    tn = _pick_tile(Hd, hidden_tile, step=256)                               # keep the 256-wide MXU full
    grid = (M // tm, Hd // tn)

    h_spec = pl.BlockSpec((tm, D), lambda i, j: (i, 0))      # constant across j -> one fetch per row tile
    rms_spec = pl.BlockSpec((1, D), lambda i, j: (0, 0))
    w1_spec = pl.BlockSpec((D, tn), lambda i, j: (0, j))
    w3_spec = pl.BlockSpec((D, tn), lambda i, j: (0, j))
    w2_spec = pl.BlockSpec((tn, D), lambda i, j: (j, 0))
    o_spec = pl.BlockSpec((tm, D), lambda i, j: (i, 0))

    return pl.pallas_call(
        functools.partial(_mlp_block_kernel, eps=eps),
        out_shape=jax.ShapeDtypeStruct((M, D), jnp.float32),
        grid_spec=pltpu.PrefetchScalarGridSpec(
            num_scalar_prefetch=0,
            grid=grid,
            in_specs=[h_spec, rms_spec, w1_spec, w3_spec, w2_spec],
            out_specs=o_spec,
            scratch_shapes=[pltpu.VMEM((tm, D), jnp.bfloat16),   # cached rms(h)
                            pltpu.VMEM((tm, D), jnp.float32)]),  # f32 accumulator over hidden tiles
        compiler_params=pltpu.CompilerParams(
            dimension_semantics=("parallel", "arbitrary"),
            vmem_limit_bytes=_vmem_limit_bytes()),
    )(h, rms_w.reshape(1, D), w1, w3, w2)


# ----------------------------------------------------------------------------- decoder

def decoder_forward(x, cos, sin, params, *, n_heads, eps=1e-6):
    B, S, D = x.shape
    half = D // 2
    # rotate_half's sign folded into the sin table ONCE on the host (no per-tile iota/where/mul).
    sin_rot = jnp.concatenate([-sin[:, :half], sin[:, half:]], axis=-1)

    # attention block: rmsnorm + projections + RoPE + SDPA + residual all in one kernel
    h = attention_block(x, params["attn_rms_w"], params["wq"], params["wv"],
                        cos, sin_rot, n_heads=n_heads, eps=eps)              # (B, S, D) bf16
    # MLP block: rmsnorm + SwiGLU + down-proj + residual fused, hidden-dim tiled
    out = mlp_block(h.reshape(B * S, D), params["ffn_rms_w"],
                    params["w1"], params["w3"], params["w2"], eps=eps)       # (B*S, D) f32
    return out.reshape(B, S, D)


# ----------------------------------------------------------------------------- reference

def decoder_reference(x, cos, sin, params, *, n_heads, eps=1e-6):
    """Pure-JAX f32 reference with identical semantics (K == Q, RoPE pre-head-split, no dropout)."""
    B, S, D = x.shape
    H = n_heads
    Dh = D // H
    f32 = lambda a: a.astype(jnp.float32)

    def rms(t, w):
        var = jnp.mean(t * t, axis=-1, keepdims=True)
        return t * lax.rsqrt(var + eps) * w

    xn = rms(x, f32(params["attn_rms_w"]))
    q = xn @ f32(params["wq"])
    v = xn @ f32(params["wv"])

    def rope(t):
        t1, t2 = t[..., : D // 2], t[..., D // 2:]
        rot = jnp.concatenate([-t2, t1], axis=-1)
        return t * cos[None] + rot * sin[None]

    q = rope(q)
    k = q                                                        # xk = self.query(x)

    def heads(t):
        return t.reshape(B, S, H, Dh).transpose(0, 2, 1, 3)

    qh, kh, vh = heads(q), heads(k), heads(v)
    s = jnp.einsum("bhqd,bhkd->bhqk", qh, kh) / math.sqrt(Dh)
    mask = jnp.tril(jnp.ones((S, S), bool))
    s = jnp.where(mask, s, -jnp.inf)
    p = jax.nn.softmax(s, axis=-1)
    attn = jnp.einsum("bhqk,bhkd->bhqd", p, vh).transpose(0, 2, 1, 3).reshape(B, S, D)

    h = x + attn
    hn = rms(h, f32(params["ffn_rms_w"]))
    g = jax.nn.silu(hn @ f32(params["w1"])) * (hn @ f32(params["w3"]))
    return h + g @ f32(params["w2"])


# ----------------------------------------------------------------------------- main

def make_params(key, dim, hidden_dim, dtype=jnp.bfloat16):
    ks = jax.random.split(key, 5)
    init = lambda k, shape: (0.02 * jax.random.normal(k, shape, jnp.float32)).astype(dtype)
    # nn.Linear(in, out) has weight (out, in) and computes x @ W.T; we store (in, out).
    return {
        "wq": init(ks[0], (dim, dim)),
        "wv": init(ks[1], (dim, dim)),
        "w1": init(ks[2], (dim, hidden_dim)),
        "w3": init(ks[3], (dim, hidden_dim)),
        "w2": init(ks[4], (hidden_dim, dim)),
        "attn_rms_w": jnp.ones((dim,), jnp.float32),
        "ffn_rms_w": jnp.ones((dim,), jnp.float32),
    }


def make_rope(seq_len, dim, base=10000.0):
    half = dim // 2
    inv_freq = 1.0 / (base ** (jnp.arange(0, half, dtype=jnp.float32) / half))
    t = jnp.arange(seq_len, dtype=jnp.float32)
    freqs = jnp.outer(t, inv_freq)                                # (S, D/2)
    emb = jnp.concatenate([freqs, freqs], axis=-1)                # (S, D)
    return jnp.cos(emb), jnp.sin(emb)


if __name__ == "__main__":
    B, S, D, H, HIDDEN = 2, 8, 128, 4, 256

    key = jax.random.PRNGKey(0)
    k_x, k_p = jax.random.split(key)
    x = jax.random.normal(k_x, (B, S, D), jnp.float32)
    cos, sin = make_rope(S, D)
    params = make_params(k_p, D, HIDDEN)

    out = decoder_forward(x, cos, sin, params, n_heads=H)
    out = jax.block_until_ready(out)

    ref = decoder_reference(x, cos, sin, params, n_heads=H)
    max_err = float(jnp.max(jnp.abs(out - ref)))

    assert out.shape == (B, S, D)
    assert bool(jnp.all(jnp.isfinite(out)))
    assert max_err < 1e-1, f"max |out - ref| = {max_err}"
    print("KERNEL_OK")
</pallas_src>

<mosaic_0001>
module attributes {stable_mosaic.version = 11 : i64} {
  func.func @_attn_block_kernel(%arg0: i32, %arg1: memref<1x8x128xf32, #tpu.memory_space<vmem>>, %arg2: memref<1x128xf32, #tpu.memory_space<vmem>>, %arg3: memref<128x128xbf16, #tpu.memory_space<vmem>>, %arg4: memref<128x128xbf16, #tpu.memory_space<vmem>>, %arg5: memref<8x128xf32, #tpu.memory_space<vmem>>, %arg6: memref<8x128xf32, #tpu.memory_space<vmem>>, %arg7: memref<1x8x128xbf16, #tpu.memory_space<vmem>>, %arg8: memref<8x128xf32, #tpu.memory_space<vmem>>) attributes {dimension_semantics = [#tpu.dimension_semantics<parallel>], iteration_bounds = array<i64: 2>, scalar_prefetch = 0 : i64, scratch_operands = 1 : i64, tpu.core_type = #tpu.core_type<tc>, window_params = [{transform_indices = @transform_0, window_bounds = array<i64: 1, 8, 128>}, {pipeline_mode = #tpu.pipeline_mode<synchronous>, transform_indices = @transform_1, window_bounds = array<i64: 1, 128>}, {pipeline_mode = #tpu.pipeline_mode<synchronous>, transform_indices = @transform_2, window_bounds = array<i64: 128, 128>}, {pipeline_mode = #tpu.pipeline_mode<synchronous>, transform_indices = @transform_3, window_bounds = array<i64: 128, 128>}, {pipeline_mode = #tpu.pipeline_mode<synchronous>, transform_indices = @transform_4, window_bounds = array<i64: 8, 128>}, {pipeline_mode = #tpu.pipeline_mode<synchronous>, transform_indices = @transform_5, window_bounds = array<i64: 8, 128>}, {transform_indices = @transform_6, window_bounds = array<i64: 1, 8, 128>}]} {
    %c0 = arith.constant 0 : index
    %c0_0 = arith.constant 0 : index
    %c0_1 = arith.constant 0 : index
    %0 = vector.load %arg1[%c0, %c0_0, %c0_1] : memref<1x8x128xf32, #tpu.memory_space<vmem>>, vector<1x8x128xf32>
    %1 = vector.shape_cast %0 : vector<1x8x128xf32> to vector<8x128xf32>
    %2 = arith.mulf %1, %1 : vector<8x128xf32>
    %cst = arith.constant dense<0.000000e+00> : vector<8xf32>
    %3 = vector.multi_reduction <add>, %2, %cst [1] : vector<8x128xf32> to vector<8xf32>
    %4 = vector.shape_cast %3 : vector<8xf32> to vector<8x1xf32>
    %cst_2 = arith.constant 1.280000e+02 : f32
    %5 = vector.broadcast %cst_2 : f32 to vector<8x1xf32>
    %6 = arith.divf %4, %5 : vector<8x1xf32>
    %cst_3 = arith.constant 9.99999997E-7 : f32
    %7 = vector.broadcast %cst_3 : f32 to vector<8x1xf32>
    %8 = arith.addf %6, %7 : vector<8x1xf32>
    %9 = math.rsqrt %8 : vector<8x1xf32>
    %10 = vector.broadcast %9 : vector<8x1xf32> to vector<8x128xf32>
    %11 = arith.mulf %1, %10 : vector<8x128xf32>
    %c0_4 = arith.constant 0 : index
    %c0_5 = arith.constant 0 : index
    %12 = vector.load %arg2[%c0_4, %c0_5] : memref<1x128xf32, #tpu.memory_space<vmem>>, vector<1x128xf32>
    %13 = vector.broadcast %12 : vector<1x128xf32> to vector<8x128xf32>
    %14 = arith.mulf %11, %13 : vector<8x128xf32>
    %15 = arith.truncf %14 : vector<8x128xf32> to vector<8x128xbf16>
    %c0_6 = arith.constant 0 : index
    %c0_7 = arith.constant 0 : index
    %16 = vector.load %arg3[%c0_6, %c0_7] : memref<128x128xbf16, #tpu.memory_space<vmem>>, vector<128x128xbf16>
    %cst_8 = arith.constant dense<0.000000e+00> : vector<8x128xf32>
    %17 = tpu.matmul %15, %16, %cst_8 {dimension_numbers = #tpu.dot_dimension_numbers<[1], [0], [0], [1], [0, 0, 1, 1], [], []>} : vector<8x128xbf16>, vector<128x128xbf16>, vector<8x128xf32> -> vector<8x128xf32>
    %c0_9 = arith.constant 0 : index
    %c0_10 = arith.constant 0 : index
    %18 = vector.load %arg4[%c0_9, %c0_10] : memref<128x128xbf16, #tpu.memory_space<vmem>>, vector<128x128xbf16>
    %cst_11 = arith.constant dense<0.000000e+00> : vector<8x128xf32>
    %19 = tpu.matmul %15, %18, %cst_11 {dimension_numbers = #tpu.dot_dimension_numbers<[1], [0], [0], [1], [0, 0, 1, 1], [], []>} : vector<8x128xbf16>, vector<128x128xbf16>, vector<8x128xf32> -> vector<8x128xf32>
    %20 = arith.truncf %19 : vector<8x128xf32> to vector<8x128xbf16>
    %21 = vector.extract_strided_slice %17 {offsets = [0, 64], sizes = [8, 64], strides = [1, 1]} : vector<8x128xf32> to vector<8x64xf32>
    %22 = vector.extract_strided_slice %17 {offsets = [0, 0], sizes = [8, 64], strides = [1, 1]} : vector<8x128xf32> to vector<8x64xf32>
    %23 = tpu.concatenate %21, %22 in 1 : vector<8x64xf32>, vector<8x64xf32> -> vector<8x128xf32>
    %c0_12 = arith.constant 0 : index
    %c0_13 = arith.constant 0 : index
    %24 = vector.load %arg5[%c0_12, %c0_13] : memref<8x128xf32, #tpu.memory_space<vmem>>, vector<8x128xf32>
    %25 = arith.mulf %17, %24 : vector<8x128xf32>
    %c0_14 = arith.constant 0 : index
    %c0_15 = arith.constant 0 : index
    %26 = vector.load %arg6[%c0_14, %c0_15] : memref<8x128xf32, #tpu.memory_space<vmem>>, vector<8x128xf32>
    %27 = arith.mulf %23, %26 : vector<8x128xf32>
    %28 = arith.addf %25, %27 : vector<8x128xf32>
    %29 = arith.truncf %28 : vector<8x128xf32> to vector<8x128xbf16>
    %cst_16 = arith.constant 0.176776692 : f32
    %30 = vector.broadcast %cst_16 : f32 to vector<8x128xf32>
    %31 = arith.mulf %28, %30 : vector<8x128xf32>
    %32 = arith.truncf %31 : vector<8x128xf32> to vector<8x128xbf16>
    %33 = tpu.iota {dimensions = array<i32: 0>} : vector<8x8xi32>
    %34 = tpu.iota {dimensions = array<i32: 1>} : vector<8x8xi32>
    %35 = arith.cmpi sle, %34, %33 : vector<8x8xi32>
    %36 = vector.extract_strided_slice %32 {offsets = [0, 0], sizes = [8, 32], strides = [1, 1]} : vector<8x128xbf16> to vector<8x32xbf16>
    %37 = vector.extract_strided_slice %29 {offsets = [0, 0], sizes = [8, 32], strides = [1, 1]} : vector<8x128xbf16> to vector<8x32xbf16>
    %cst_17 = arith.constant dense<0.000000e+00> : vector<8x8xf32>
    %38 = tpu.matmul %36, %37, %cst_17 {dimension_numbers = #tpu.dot_dimension_numbers<[1], [1], [0], [0], [0, 0, 1, 0], [], []>} : vector<8x32xbf16>, vector<8x32xbf16>, vector<8x8xf32> -> vector<8x8xf32>
    %cst_18 = arith.constant -1.000000e+30 : f32
    %39 = vector.broadcast %cst_18 : f32 to vector<8x8xf32>
    %40 = arith.select %35, %38, %39 : vector<8x8xi1>, vector<8x8xf32>
    %cst_19 = arith.constant dense<0xFF800000> : vector<8xf32>
    %41 = vector.multi_reduction <maximumf>, %40, %cst_19 [1] : vector<8x8xf32> to vector<8xf32>
    %42 = vector.shape_cast %41 : vector<8xf32> to vector<8x1xf32>
    %43 = vector.broadcast %42 : vector<8x1xf32> to vector<8x8xf32>
    %44 = arith.subf %40, %43 : vector<8x8xf32>
    %45 = math.exp %44 : vector<8x8xf32>
    %cst_20 = arith.constant dense<0.000000e+00> : vector<8xf32>
    %46 = vector.multi_reduction <add>, %45, %cst_20 [1] : vector<8x8xf32> to vector<8xf32>
    %47 = vector.shape_cast %46 : vector<8xf32> to vector<8x1xf32>
    %cst_21 = arith.constant 1.000000e+00 : f32
    %48 = vector.broadcast %cst_21 : f32 to vector<8x1xf32>
    %49 = arith.divf %48, %47 : vector<8x1xf32>
    %50 = vector.broadcast %49 : vector<8x1xf32> to vector<8x8xf32>
    %51 = arith.mulf %45, %50 : vector<8x8xf32>
    %52 = arith.truncf %51 : vector<8x8xf32> to vector<8x8xbf16>
    %53 = vector.extract_strided_slice %20 {offsets = [0, 0], sizes = [8, 32], strides = [1, 1]} : vector<8x128xbf16> to vector<8x32xbf16>
    %cst_22 = arith.constant dense<0.000000e+00> : vector<8x32xf32>
    %54 = tpu.matmul %52, %53, %cst_22 {dimension_numbers = #tpu.dot_dimension_numbers<[1], [0], [0], [1], [0, 0, 1, 1], [], []>} : vector<8x8xbf16>, vector<8x32xbf16>, vector<8x32xf32> -> vector<8x32xf32>
    %c0_23 = arith.constant 0 : index
    %c0_24 = arith.constant 0 : index
    %55 = vector.load %arg8[%c0_23, %c0_24] : memref<8x128xf32, #tpu.memory_space<vmem>>, vector<8x32xf32>
    tpu.vector_store %arg8[%c0_23, %c0_24], %54 {strides = array<i32>} : memref<8x128xf32, #tpu.memory_space<vmem>>, vector<8x32xf32>,
    %56 = vector.extract_strided_slice %32 {offsets = [0, 32], sizes = [8, 32], strides = [1, 1]} : vector<8x128xbf16> to vector<8x32xbf16>
    %57 = vector.extract_strided_slice %29 {offsets = [0, 32], sizes = [8, 32], strides = [1, 1]} : vector<8x128xbf16> to vector<8x32xbf16>
    %cst_25 = arith.constant dense<0.000000e+00> : vector<8x8xf32>
    %58 = tpu.matmul %56, %57, %cst_25 {dimension_numbers = #tpu.dot_dimension_numbers<[1], [1], [0], [0], [0, 0, 1, 0], [], []>} : vector<8x32xbf16>, vector<8x32xbf16>, vector<8x8xf32> -> vector<8x8xf32>
    %cst_26 = arith.constant -1.000000e+30 : f32
    %59 = vector.broadcast %cst_26 : f32 to vector<8x8xf32>
    %60 = arith.select %35, %58, %59 : vector<8x8xi1>, vector<8x8xf32>
    %cst_27 = arith.constant dense<0xFF800000> : vector<8xf32>
    %61 = vector.multi_reduction <maximumf>, %60, %cst_27 [1] : vector<8x8xf32> to vector<8xf32>
    %62 = vector.shape_cast %61 : vector<8xf32> to vector<8x1xf32>
    %63 = vector.broadcast %62 : vector<8x1xf32> to vector<8x8xf32>
    %64 = arith.subf %60, %63 : vector<8x8xf32>
    %65 = math.exp %64 : vector<8x8xf32>
    %cst_28 = arith.constant dense<0.000000e+00> : vector<8xf32>
    %66 = vector.multi_reduction <add>, %65, %cst_28 [1] : vector<8x8xf32> to vector<8xf32>
    %67 = vector.shape_cast %66 : vector<8xf32> to vector<8x1xf32>
    %cst_29 = arith.constant 1.000000e+00 : f32
    %68 = vector.broadcast %cst_29 : f32 to vector<8x1xf32>
    %69 = arith.divf %68, %67 : vector<8x1xf32>
    %70 = vector.broadcast %69 : vector<8x1xf32> to vector<8x8xf32>
    %71 = arith.mulf %65, %70 : vector<8x8xf32>
    %72 = arith.truncf %71 : vector<8x8xf32> to vector<8x8xbf16>
    %73 = vector.extract_strided_slice %20 {offsets = [0, 32], sizes = [8, 32], strides = [1, 1]} : vector<8x128xbf16> to vector<8x32xbf16>
    %cst_30 = arith.constant dense<0.000000e+00> : vector<8x32xf32>
    %74 = tpu.matmul %72, %73, %cst_30 {dimension_numbers = #tpu.dot_dimension_numbers<[1], [0], [0], [1], [0, 0, 1, 1], [], []>} : vector<8x8xbf16>, vector<8x32xbf16>, vector<8x32xf32> -> vector<8x32xf32>
    %c0_31 = arith.constant 0 : index
    %c32 = arith.constant 32 : index
    %75 = vector.load %arg8[%c0_31, %c32] : memref<8x128xf32, #tpu.memory_space<vmem>>, vector<8x32xf32>
    tpu.vector_store %arg8[%c0_31, %c32], %74 {strides = array<i32>} : memref<8x128xf32, #tpu.memory_space<vmem>>, vector<8x32xf32>,
    %76 = vector.extract_strided_slice %32 {offsets = [0, 64], sizes = [8, 32], strides = [1, 1]} : vector<8x128xbf16> to vector<8x32xbf16>
    %77 = vector.extract_strided_slice %29 {offsets = [0, 64], sizes = [8, 32], strides = [1, 1]} : vector<8x128xbf16> to vector<8x32xbf16>
    %cst_32 = arith.constant dense<0.000000e+00> : vector<8x8xf32>
    %78 = tpu.matmul %76, %77, %cst_32 {dimension_numbers = #tpu.dot_dimension_numbers<[1], [1], [0], [0], [0, 0, 1, 0], [], []>} : vector<8x32xbf16>, vector<8x32xbf16>, vector<8x8xf32> -> vector<8x8xf32>
    %cst_33 = arith.constant -1.000000e+30 : f32
    %79 = vector.broadcast %cst_33 : f32 to vector<8x8xf32>
    %80 = arith.select %35, %78, %79 : vector<8x8xi1>, vector<8x8xf32>
    %cst_34 = arith.constant dense<0xFF800000> : vector<8xf32>
    %81 = vector.multi_reduction <maximumf>, %80, %cst_34 [1] : vector<8x8xf32> to vector<8xf32>
    %82 = vector.shape_cast %81 : vector<8xf32> to vector<8x1xf32>
    %83 = vector.broadcast %82 : vector<8x1xf32> to vector<8x8xf32>
    %84 = arith.subf %80, %83 : vector<8x8xf32>
    %85 = math.exp %84 : vector<8x8xf32>
    %cst_35 = arith.constant dense<0.000000e+00> : vector<8xf32>
    %86 = vector.multi_reduction <add>, %85, %cst_35 [1] : vector<8x8xf32> to vector<8xf32>
    %87 = vector.shape_cast %86 : vector<8xf32> to vector<8x1xf32>
    %cst_36 = arith.constant 1.000000e+00 : f32
    %88 = vector.broadcast %cst_36 : f32 to vector<8x1xf32>
    %89 = arith.divf %88, %87 : vector<8x1xf32>
    %90 = vector.broadcast %89 : vector<8x1xf32> to vector<8x8xf32>
    %91 = arith.mulf %85, %90 : vector<8x8xf32>
    %92 = arith.truncf %91 : vector<8x8xf32> to vector<8x8xbf16>
    %93 = vector.extract_strided_slice %20 {offsets = [0, 64], sizes = [8, 32], strides = [1, 1]} : vector<8x128xbf16> to vector<8x32xbf16>
    %cst_37 = arith.constant dense<0.000000e+00> : vector<8x32xf32>
    %94 = tpu.matmul %92, %93, %cst_37 {dimension_numbers = #tpu.dot_dimension_numbers<[1], [0], [0], [1], [0, 0, 1, 1], [], []>} : vector<8x8xbf16>, vector<8x32xbf16>, vector<8x32xf32> -> vector<8x32xf32>
    %c0_38 = arith.constant 0 : index
    %c64 = arith.constant 64 : index
    %95 = vector.load %arg8[%c0_38, %c64] : memref<8x128xf32, #tpu.memory_space<vmem>>, vector<8x32xf32>
    tpu.vector_store %arg8[%c0_38, %c64], %94 {strides = array<i32>} : memref<8x128xf32, #tpu.memory_space<vmem>>, vector<8x32xf32>,
    %96 = vector.extract_strided_slice %32 {offsets = [0, 96], sizes = [8, 32], strides = [1, 1]} : vector<8x128xbf16> to vector<8x32xbf16>
    %97 = vector.extract_strided_slice %29 {offsets = [0, 96], sizes = [8, 32], strides = [1, 1]} : vector<8x128xbf16> to vector<8x32xbf16>
    %cst_39 = arith.constant dense<0.000000e+00> : vector<8x8xf32>
    %98 = tpu.matmul %96, %97, %cst_39 {dimension_numbers = #tpu.dot_dimension_numbers<[1], [1], [0], [0], [0, 0, 1, 0], [], []>} : vector<8x32xbf16>, vector<8x32xbf16>, vector<8x8xf32> -> vector<8x8xf32>
    %cst_40 = arith.constant -1.000000e+30 : f32
    %99 = vector.broadcast %cst_40 : f32 to vector<8x8xf32>
    %100 = arith.select %35, %98, %99 : vector<8x8xi1>, vector<8x8xf32>
    %cst_41 = arith.constant dense<0xFF800000> : vector<8xf32>
    %101 = vector.multi_reduction <maximumf>, %100, %cst_41 [1] : vector<8x8xf32> to vector<8xf32>
    %102 = vector.shape_cast %101 : vector<8xf32> to vector<8x1xf32>
    %103 = vector.broadcast %102 : vector<8x1xf32> to vector<8x8xf32>
    %104 = arith.subf %100, %103 : vector<8x8xf32>
    %105 = math.exp %104 : vector<8x8xf32>
    %cst_42 = arith.constant dense<0.000000e+00> : vector<8xf32>
    %106 = vector.multi_reduction <add>, %105, %cst_42 [1] : vector<8x8xf32> to vector<8xf32>
    %107 = vector.shape_cast %106 : vector<8xf32> to vector<8x1xf32>
    %cst_43 = arith.constant 1.000000e+00 : f32
    %108 = vector.broadcast %cst_43 : f32 to vector<8x1xf32>
    %109 = arith.divf %108, %107 : vector<8x1xf32>
    %110 = vector.broadcast %109 : vector<8x1xf32> to vector<8x8xf32>
    %111 = arith.mulf %105, %110 : vector<8x8xf32>
    %112 = arith.truncf %111 : vector<8x8xf32> to vector<8x8xbf16>
    %113 = vector.extract_strided_slice %20 {offsets = [0, 96], sizes = [8, 32], strides = [1, 1]} : vector<8x128xbf16> to vector<8x32xbf16>
    %cst_44 = arith.constant dense<0.000000e+00> : vector<8x32xf32>
    %114 = tpu.matmul %112, %113, %cst_44 {dimension_numbers = #tpu.dot_dimension_numbers<[1], [0], [0], [1], [0, 0, 1, 1], [], []>} : vector<8x8xbf16>, vector<8x32xbf16>, vector<8x32xf32> -> vector<8x32xf32>
    %c0_45 = arith.constant 0 : index
    %c96 = arith.constant 96 : index
    %115 = vector.load %arg8[%c0_45, %c96] : memref<8x128xf32, #tpu.memory_space<vmem>>, vector<8x32xf32>
    tpu.vector_store %arg8[%c0_45, %c96], %114 {strides = array<i32>} : memref<8x128xf32, #tpu.memory_space<vmem>>, vector<8x32xf32>,
    %c0_46 = arith.constant 0 : index
    %c0_47 = arith.constant 0 : index
    %116 = vector.load %arg8[%c0_46, %c0_47] : memref<8x128xf32, #tpu.memory_space<vmem>>, vector<8x128xf32>
    %117 = arith.addf %1, %116 : vector<8x128xf32>
    %118 = arith.truncf %117 : vector<8x128xf32> to vector<8x128xbf16>
    %c0_48 = arith.constant 0 : index
    %c0_49 = arith.constant 0 : index
    %c0_50 = arith.constant 0 : index
    %119 = vector.load %arg7[%c0_48, %c0_49, %c0_50] : memref<1x8x128xbf16, #tpu.memory_space<vmem>>, vector<1x8x128xbf16>
    %120 = vector.shape_cast %119 : vector<1x8x128xbf16> to vector<8x128xbf16>
    %121 = vector.shape_cast %118 : vector<8x128xbf16> to vector<1x8x128xbf16>
    tpu.vector_store %arg7[%c0_48, %c0_49, %c0_50], %121 {strides = array<i32>} : memref<1x8x128xbf16, #tpu.memory_space<vmem>>, vector<1x8x128xbf16>,
    return
  }
  func.func @transform_0(%arg0: i32) -> (i32, i32, i32) {
    %c0_i32 = arith.constant 0 : i32
    %c0_i32_0 = arith.constant 0 : i32
    %c0_i32_1 = arith.constant 0 : i32
    return %arg0, %c0_i32, %c0_i32_0 : i32, i32, i32
  }
  func.func @transform_1(%arg0: i32) -> (i32, i32) {
    %c0_i32 = arith.constant 0 : i32
    %c0_i32_0 = arith.constant 0 : i32
    %c0_i32_1 = arith.constant 0 : i32
    return %c0_i32, %c0_i32_0 : i32, i32
  }
  func.func @transform_2(%arg0: i32) -> (i32, i32) {
    %c0_i32 = arith.constant 0 : i32
    %c0_i32_0 = arith.constant 0 : i32
    %c0_i32_1 = arith.constant 0 : i32
    return %c0_i32, %c0_i32_0 : i32, i32
  }
  func.func @transform_3(%arg0: i32) -> (i32, i32) {
    %c0_i32 = arith.constant 0 : i32
    %c0_i32_0 = arith.constant 0 : i32
    %c0_i32_1 = arith.constant 0 : i32
    return %c0_i32, %c0_i32_0 : i32, i32
  }
  func.func @transform_4(%arg0: i32) -> (i32, i32) {
    %c0_i32 = arith.constant 0 : i32
    %c0_i32_0 = arith.constant 0 : i32
    %c0_i32_1 = arith.constant 0 : i32
    return %c0_i32, %c0_i32_0 : i32, i32
  }
  func.func @transform_5(%arg0: i32) -> (i32, i32) {
    %c0_i32 = arith.constant 0 : i32
    %c0_i32_0 = arith.constant 0 : i32
    %c0_i32_1 = arith.constant 0 : i32
    return %c0_i32, %c0_i32_0 : i32, i32
  }
  func.func @transform_6(%arg0: i32) -> (i32, i32, i32) {
    %c0_i32 = arith.constant 0 : i32
    %c0_i32_0 = arith.constant 0 : i32
    %c0_i32_1 = arith.constant 0 : i32
    return %arg0, %c0_i32, %c0_i32_0 : i32, i32, i32
  }
}

</mosaic_0001>

<bundles_post_ra>
// kernel: tpu_custom_call.1
= control target key start
LH: loop header
LB: loop body
LE: loop exit
PB: predicated region body
PF: predicated region fallthrough
CT: control target
= control target key end

     0   :  { %11 = vsyncpa [#allocation4], 0  ;;  %s1927_s0 = inlined_call_operand.hbm [shape: f32[2,8,128], index: 0, kind: input, shape index: {}]   ;;  %s1928_s1 = inlined_call_operand.vmem [shape: f32[1,128], index: 1, kind: input, shape index: {}]   ;;  %s1929_s2 = inlined_call_operand.hbm [shape: bf16[128,128], index: 2, kind: input, shape index: {}]   ;;  %s1930_s3 = inlined_call_operand.hbm [shape: bf16[128,128], index: 3, kind: input, shape index: {}]   ;;  %s1931_s4 = inlined_call_operand.vmem [shape: f32[8,128], index: 4, kind: input, shape index: {}]   ;;  %s1932_s5 = inlined_call_operand.vmem [shape: f32[8,128], index: 5, kind: input, shape index: {}]   ;;  %s1933_s6 = inlined_call_operand.hbm [shape: bf16[2,8,128], index: 6, kind: output, shape index: {}]  }
   0x1   :  { %13 = vsyncpa [#allocation4 + $0x1], 0 }
   0x2   :  { %14 = vsyncpa [#allocation7], 0 }
   0x3   :  { %15 = vsyncpa [#allocation5], 0 }
   0x4   :  { %17 = vsyncpa [#allocation5 + $0x1], 0  ;;  %s1590_s21 = smov 0   ;;  %s1592_s22 = smov 0  }
   0x5   :  { %s1594_s23 = smov 0   ;;  %s1596_s24 = smov 0  }
   0x6 LB: > { %s1611_s25 = sadd.s32 4294967295, %s1542_s24   ;;  %s1115_s26 = sadd.s32 4294967294, %s1542_s24   ;;  %s1542_s24 = sphi %s1596_s24, %s1953_s24   ;;  %s1538_s23 = sphi %s1594_s23, %s1952_s23   ;;  %s1534_s22 = sphi %s1592_s22, %s1951_s22   ;;  %s1530_s21 = sphi %s1590_s21, %s1950_s21  }
   0x7   : > { %p43_p0 = scmp.ne.s32.totalorder %s1534_s22, %s1530_s21  ;;  %p1934_p1 = scmp.eq.s32.totalorder %s1611_s25, 0 }
   0x8   : > { %p178_p3 = scmp.eq.s32.totalorder %s1115_s26, 1  ;;  %p1116_p5 = scmp.ge.s32.totalorder %s1542_s24, 1 }
   0x9   : > { %p1620_p4 = por %p1934_p1, %p43_p0  ;;  %p185_p7 = scmp.lt.s32.totalorder %s1542_s24, 3 }
   0xa   : > { %p1625_p6 = por %p178_p3, %p43_p0  ;;  %s1544_s30 = smov [#allocation6]  }
   0xb   : > { %s1937_s27 = scalar_select %p1620_p4, 1, 0 }
   0xc   : > { %s1938_s28 = scalar_select %p1625_p6, 1, 0 }
   0xd   : > { %p1630_p8 = pnand %p1116_p5, %p185_p7  ;;  %s200_s7 = sshll.u32 %s1544_s30, 4  ;;  %s1634_s7 = int_to_ptr.vmem [resolvable:$true] %s200_s7 }
   0xe   : > { %s1545_s9 = smov [#allocation8]   ;;  %s1386_s13 = scalar_lea.hbm %s1929_s2, 1024 }
   0xf   : > { %p1290_p9 = pneg %p1630_p8  ;;  %s213_s10 = sshll.u32 %s1545_s9, 4  ;;  %s1645_s10 = int_to_ptr.vmem [resolvable:$true] %s213_s10 }
  0x10   : > { %p1387_p12 = scmp.ne.s32.totalorder %s1929_s2, %s1386_s13  ;;  %p1393_p5 = scmp.lt.u32.totalorder %s1386_s13, %s1929_s2 }
  0x11   : > { %p1641_p11 = pnand %p1290_p9, %p1934_p1 }
  0x13   : > { %p1388_p13 = pneg %p1641_p11 }
  0x15   : > { %p1389_p0 = pnand %p1388_p13, %p1387_p12 }
  0x17   : > { %p1390_p3 = pneg %p1389_p0 }
  0x19   : > { %p1395_p7 = pnand %p1393_p5, %p1390_p3 }
  0x1b   : > { %1398 = shalt.err (!%p1395_p7)
}
  0x1c   : > { %s1399_s18 = scalar_lea.vmem %s1634_s7, 1024  ;;  %p1407_p2 = scmp.lt.s32.totalorder %s1634_s7, %s1634_s7 }
  0x1d   : > { %p1400_p9 = scmp.ne.s32.totalorder %s1634_s7, %s1399_s18  ;;  %p1408_p12 = scmp.lt.s32.totalorder %s1399_s18, %s1399_s18 }
  0x1f   : > { %p1402_p10 = pnand %p1400_p9, %p1388_p13  ;;  %p1409_p0 = por %p1408_p12, %p1407_p2 }
  0x21   : > { %p1403_p1 = pneg %p1402_p10 }
  0x23   : > { %p1410_p6 = pnand %p1409_p0, %p1403_p1 }
  0x25   : > { %1413 = shalt.err (!%p1410_p6)
}
  0x26   : > { %s1546_s19 = smov 64   ;;  %s1547_s20 = smov 4  }
  0x27   : > { %1293 = dma.hbm_to_vmem [thread:$0]  (!%p1641_p11), %s1929_s2, 1024, %s1634_s7, [#allocation7], %s1546_s19, %s1546_s19, %s1547_s20  }
  0x28   : > { %s1414_s12 = scalar_lea.hbm %s1930_s3, 1024 }
  0x29   : > { %p1415_p2 = scmp.ne.s32.totalorder %s1930_s3, %s1414_s12  ;;  %p1421_p10 = scmp.lt.u32.totalorder %s1414_s12, %s1930_s3 }
  0x2b   : > { %p1417_p1 = pnand %p1415_p2, %p1388_p13 }
  0x2d   : > { %p1418_p6 = pneg %p1417_p1 }
  0x2f   : > { %p1423_p3 = pnand %p1421_p10, %p1418_p6 }
  0x31   : > { %1426 = shalt.err (!%p1423_p3)
}
  0x32   : > { %s1427_s7 = scalar_lea.vmem %s1645_s10, 1024  ;;  %p1435_p12 = scmp.lt.s32.totalorder %s1645_s10, %s1645_s10 }
  0x33   : > { %p1428_p5 = scmp.ne.s32.totalorder %s1645_s10, %s1427_s7  ;;  %p1436_p0 = scmp.lt.s32.totalorder %s1427_s7, %s1427_s7 }
  0x35   : > { %p1430_p7 = pnand %p1428_p5, %p1388_p13  ;;  %p1437_p2 = por %p1436_p0, %p1435_p12 }
  0x37   : > { %p1431_p9 = pneg %p1430_p7 }
  0x39   : > { %p1438_p1 = pnand %p1437_p2, %p1431_p9 }
  0x3b   : > { %1441 = shalt.err (!%p1438_p1)
}
  0x3c   : > { %1296 = dma.hbm_to_vmem [thread:$0]  (!%p1641_p11), %s1930_s3, 1024, %s1645_s10, [#allocation7], %s1546_s19, %s1546_s19, %s1547_s20  }
  0x3d   : > { %s1700_s26 = sadd.s32 1, %s1542_s24   ;;  %s30_s8 = sadd.s32 1, %s1538_s23 }
  0x3e   : > { %s27_s30 = ssub.s32 %s1542_s24, %s1700_s26  ;;  %p37_p13 = scmp.ne.s32.totalorder %s1538_s23, %s1534_s22 }
  0x3f   : > { %p28_p6 = scmp.eq.s32.totalorder %s27_s30, 0  ;;  %p38_p10 = scmp.eq.s32.totalorder %s1542_s24, 0 }
  0x40   : > { %p1941_p3 = scmp.eq.s32.totalorder %s1611_s25, 1  ;;  %p1307_p7 = scmp.lt.s32.totalorder %s1542_s24, 2 }
  0x41   : > { %s1716_s11 = scalar_select %p28_p6, %s1538_s23, %s30_s8  }
  0x42   : > { %p1710_p5 = por %p1941_p3, %p37_p13  ;;  %p39_p9 = por %p38_p10, %p37_p13 }
  0x43   : > { %s233_s12 = sand.u32 1, %s1538_s23   ;;  %s1121_s10 = sshll.u32 %s1542_s24, 7 }
  0x44   : > { %s1942_s9 = scalar_select %p1710_p5, 1, 0 }
  0x45   : > { %s1120_s13 = sshll.u32 %s233_s12, 3  ;;  %s1723_s14 = scalar_lea.hbm %s1927_s0, %s1121_s10 }
  0x46   : > { %s237_s15 = scalar_lea.vmem [#allocation3], %s1120_s13  ;;  %p1727_p11 = pnand %p1307_p7, %p39_p9 }
  0x47   : > { %s244_s16 = sshll.u32 %s237_s15, 4  ;;  %s234_s17 = scalar_lea.sflag [#allocation4], %s233_s12  ;;  %s1725_s16 = int_to_ptr.vmem [resolvable:$true] %s244_s16 }
  0x48   : > { %s1442_s18 = scalar_lea.hbm %s1723_s14, 128  ;;  %p1444_p0 = pneg %p1727_p11 }
  0x49   : > { %p1443_p12 = scmp.ne.s32.totalorder %s1723_s14, %s1442_s18  ;;  %s1447_s13 = scalar_lea.hbm %s1927_s0, 256 }
  0x4a   : > { %p1448_p13 = scmp.lt.u32.totalorder %s1723_s14, %s1927_s0  ;;  %p1449_p6 = scmp.lt.u32.totalorder %s1447_s13, %s1442_s18 }
  0x4b   : > { %p1445_p2 = pnand %p1444_p0, %p1443_p12  ;;  %p1451_p3 = scmp.lt.u32.totalorder %s1442_s18, %s1723_s14 }
  0x4c   : > { %p1450_p10 = por %p1449_p6, %p1448_p13 }
  0x4d   : > { %p1446_p1 = pneg %p1445_p2 }
  0x4e   : > { %p1452_p7 = por %p1451_p3, %p1450_p10 }
  0x50   : > { %p1453_p9 = pnand %p1452_p7, %p1446_p1 }
  0x52   : > { %1456 = shalt.err (!%p1453_p9)
}
  0x53   : > { %s1457_s12 = scalar_lea.vmem %s1725_s16, 128  ;;  %s1548_s20 = smov [#allocation3]  }
  0x54   : > { %p1458_p12 = scmp.ne.s32.totalorder %s1725_s16, %s1457_s12  ;;  %s1462_s15 = sshll.u32 %s1548_s20, 4  ;;  %s1463_s15 = int_to_ptr.vmem [resolvable:$false] %s1462_s15 }
  0x55   : > { %s1464_s8 = scalar_lea.vmem %s1463_s15, 256  ;;  %p1465_p4 = scmp.lt.s32.totalorder %s1725_s16, %s1463_s15 }
  0x56   : > { %p1460_p2 = pnand %p1458_p12, %p1444_p0  ;;  %p1466_p13 = scmp.lt.s32.totalorder %s1464_s8, %s1457_s12 }
  0x58   : > { %p1461_p5 = pneg %p1460_p2  ;;  %p1467_p6 = por %p1466_p13, %p1465_p4 }
  0x5a   : > { %p1468_p10 = pnand %p1467_p6, %p1461_p5 }
  0x5c   : > { %1471 = shalt.err (!%p1468_p10)
}
  0x5d   : > { %1300 = dma.hbm_to_vmem [thread:$0]  (!%p1727_p11), %s1723_s14, 128, %s1725_s16, %s234_s17  }
  0x5e   : > { %253 = sbr.rel (%p1630_p8) target bundleno = 1662 (0x67e), region = 44  ;;  %s1759_s18 = sand.u32 (!%p1630_p8), 1, %s1534_s22  }
  0x5f   : > { %s1123_s30 = sshll.u32 (!%p1630_p8), %s1759_s18, 3  ;;  %s256_s13 = scalar_lea.sflag (!%p1630_p8), [#allocation4], %s1759_s18 }
  0x60   : > { %s259_s10 = scalar_lea.vmem (!%p1630_p8), [#allocation3], %s1123_s30  ;;  %p1944_p4 = scmp.ne.s32.totalorder (!%p1630_p8), %s1937_s27, 0 }
  0x65   : > { %1517 = dma.done.wait (%p1944_p4), %s256_s13, 128  }
  0x66   : > { %1519 = vsyncadd (%p1944_p4), %s256_s13, 4294967168  ;;  %p1945_p5 = scmp.eq.s32.totalorder %s1611_s25, 0 }
  0x68   : > { %1521 = dma.done.wait (%p1945_p5), [#allocation7], 2048   ;;  %p1946_p11 = pmov %p1945_p5 }
  0x69   : > { %v1549_v0 = vmov 0.0   ;;  %v1773_v1 = vld [vmem:[%s259_s10] sm:$0xff]  ;;  %v1352_v3 = vld [vmem:[#allocation6] sm:$0xff]   ;;  %v1354_v5 = vld [vmem:[#allocation6 + $0x8] sm:$0xff]   ;;  %vm1550_vm0 = vmmov 0   ;;  %vm606_vm1 = vcmask 1043456   ;;  %v536_v56 = vlaneseq }
  0x6a   : > { %1523 = vsyncadd (%p1946_p11), [#allocation7], 4294965248  ;;  %1190 = vmatprep.subr.bf16.mxu0 %v1549_v0  ;;  %1210 = vmatprep.subr.bf16.mxu1 %v1549_v0  ;;  %v298_v2 = vmul.f32 %v1773_v1, %v1773_v1  ;;  %v1353_v4 = vld [vmem:[#allocation8] sm:$0xff]   ;;  %v1355_v6 = vld [vmem:[#allocation8 + $0x8] sm:$0xff]   ;;  %s1551_s14 = smov 64   ;;  %vm541_vm2 = vcmask 261120  }
  0x6b   : > { %1191 = vmatpush3.bf16.msra.mxu0 %v1352_v3  ;;  %1211 = vmatpush3.bf16.msra.mxu1 %v1353_v4  ;;  %v1356_v7 = vld [vmem:[#allocation6 + $0x10] sm:$0xff]   ;;  %v1358_v9 = vld [vmem:[#allocation6 + $0x18] sm:$0xff]   ;;  %v1360_v11 = vld [vmem:[#allocation6 + $0x20] sm:$0xff]   ;;  %s1552_s12 = smov 96   ;;  %s1553_s20 = smov 32   ;;  %v537_v57 = vshrl.u32 %v536_v56, 7 }
  0x6c   : > { %299 = vadd.xlane.f32.xlu0 %v298_v2  ;;  %1192 = vmatprep.subr.bf16.mxu0 %v1549_v0  ;;  %v1357_v8 = vld [vmem:[#allocation8 + $0x10] sm:$0xff]   ;;  %v1359_v10 = vld [vmem:[#allocation8 + $0x18] sm:$0xff]   ;;  %v1361_v12 = vld [vmem:[#allocation8 + $0x20] sm:$0xff]   ;;  %v539_v58 = vand.u32 127, %v536_v56  ;;  %vm589_vm4 = vcmask 64512   ;;  %vm770_vm5 = vcmask 523520  }
  0x6d   : > { %1212 = vmatprep.subr.bf16.mxu1 %v1549_v0  ;;  %1206 = vmatprep.mubr.msk.bf16.mxu0 %vm1550_vm0, %v1549_v0  ;;  %v1362_v13 = vld [vmem:[#allocation6 + $0x28] sm:$0xff]   ;;  %v1364_v15 = vld [vmem:[#allocation6 + $0x30] sm:$0xff]   ;;  %v1366_v17 = vld [vmem:[#allocation6 + $0x38] sm:$0xff]   ;;  %vm888_vm6 = vcmask 785920   ;;  %vm1006_vm7 = vcmask 1048320   ;;  %s1126_s15 = sshll.u32 %s1759_s18, 2 }
  0x6e   : > { %1226 = vmatprep.mubr.msk.bf16.mxu1 %vm1550_vm0, %v1549_v0  ;;  %v1363_v14 = vld [vmem:[#allocation8 + $0x28] sm:$0xff]   ;;  %v1365_v16 = vld [vmem:[#allocation8 + $0x30] sm:$0xff]   ;;  %v1367_v18 = vld [vmem:[#allocation8 + $0x38] sm:$0xff]   ;;  %vm540_vm3 = vcmp.le.s32.totalorder %v539_v58, %v537_v57  ;;  %s1153_s8 = sshll.u32 %s1611_s25, 6  ;;  %s295_s30 = scalar_lea.vmem [#allocation9], %s1126_s15 }
  0x6f   : > { %1193 = vmatpush3.bf16.msra.mxu0 %v1354_v5  ;;  %1213 = vmatpush3.bf16.msra.mxu1 %v1355_v6  ;;  %v1127_v23 = vld [vmem:[%s1928_s1] ss:$0 sm:$0xff]  ;;  %s1026_s13 = sshll.u32 %s295_s30, 4  ;;  %s1883_s29 = scalar_lea.hbm %s1933_s6, %s1153_s8  ;;  %s1885_s13 = int_to_ptr.vmem [resolvable:$true] %s1026_s13 }
  0x70   : > { %1194 = vmatprep.subr.bf16.mxu0 %v1549_v0  ;;  %1214 = vmatprep.subr.bf16.mxu1 %v1549_v0  ;;  %v528_v37 = vld [vmem:[%s1931_s4] sm:$0xff]  ;;  %s1472_s16 = scalar_lea.vmem %s1885_s13, 64  ;;  %p1947_p0 = scmp.ne.s32.totalorder %s1942_s9, 0 }
  0x71   : > { %v530_v38 = vld [vmem:[%s1932_s5] sm:$0xff]  ;;  %p1473_p8 = scmp.ne.s32.totalorder %s1885_s13, %s1472_s16  ;;  %s1554_s25 = smov [#allocation9]  }
  0x72   : > { %s1476_s7 = sshll.u32 %s1554_s25, 4  ;;  %s1477_s7 = int_to_ptr.vmem [resolvable:$false] %s1476_s7 }
  0x73   : > { %1195 = vmatpush3.bf16.msra.mxu0 %v1356_v7  ;;  %1215 = vmatpush3.bf16.msra.mxu1 %v1357_v8  ;;  %p1474_p1 = pnand %p1473_p8, %p1947_p0  ;;  %s1478_s17 = scalar_lea.vmem %s1477_s7, 128 }
  0x74   : > { %1196 = vmatprep.subr.bf16.mxu0 %v1549_v0  ;;  %1216 = vmatprep.subr.bf16.mxu1 %v1549_v0  ;;  %p1479_p7 = scmp.lt.s32.totalorder %s1885_s13, %s1477_s7  ;;  %p1480_p9 = scmp.lt.s32.totalorder %s1478_s17, %s1472_s16 }
  0x75   : > { %p1475_p3 = pneg %p1474_p1 }
  0x76   : > { %p1481_p12 = por %p1480_p9, %p1479_p7 }
  0x77   : > { %1197 = vmatpush3.bf16.msra.mxu0 %v1358_v9  ;;  %1217 = vmatpush3.bf16.msra.mxu1 %v1359_v10 }
  0x78   : > { %1198 = vmatprep.subr.bf16.mxu0 %v1549_v0  ;;  %1218 = vmatprep.subr.bf16.mxu1 %v1549_v0  ;;  %p1482_p2 = pnand %p1481_p12, %p1475_p3 }
  0x7b   : > { %1199 = vmatpush3.bf16.msra.mxu0 %v1360_v11  ;;  %1219 = vmatpush3.bf16.msra.mxu1 %v1361_v12 }
  0x7c   : > { %1200 = vmatprep.subr.bf16.mxu0 %v1549_v0  ;;  %1220 = vmatprep.subr.bf16.mxu1 %v1549_v0 }
  0x7f   : > { %1201 = vmatpush3.bf16.msra.mxu0 %v1362_v13  ;;  %1221 = vmatpush3.bf16.msra.mxu1 %v1363_v14 }
  0x80   : > { %1202 = vmatprep.subr.bf16.mxu0 %v1549_v0  ;;  %1222 = vmatprep.subr.bf16.mxu1 %v1549_v0 }
  0x83   : > { %1203 = vmatpush3.bf16.msra.mxu0 %v1364_v15  ;;  %1223 = vmatpush3.bf16.msra.mxu1 %v1365_v16 }
  0x84   : > { %1204 = vmatprep.subr.bf16.mxu0 %v1549_v0  ;;  %1224 = vmatprep.subr.bf16.mxu1 %v1549_v0 }
  0x87   : > { %1205 = vmatpush3.bf16.msra.mxu0 %v1366_v17  ;;  %1225 = vmatpush3.bf16.msra.mxu1 %v1367_v18 }
  0x88   : > { %1236 = vmatprep.subr.bf16.mxu1 %v1549_v0  ;;  %1230 = vmatprep.subr.bf16.mxu0 %v1549_v0 }
  0xf9   : > { %v300_v19 = vpop.xlane.xlu0 %299 }
  0xfa   : > { %v302_v20 = vmul.f32 0.0078125, %v300_v19 }
  0xfc   : > { %v303_v21 = vadd.f32 1e-06, %v302_v20 }
  0xfe   : > { %1368 = vrsqrt.f32 %v303_v21 }
 0x108   : > { %v1369_v22 = vpop.eup %1368 }
 0x109   : > { %v305_v24 = vmul.f32 %v1369_v22, %v1773_v1 }
 0x10b   : > { %v313_v25 = vmul.f32 %v1127_v23, %v305_v24 }
 0x10d   : > { %v314_v26 = vpack.c.bf16 %v313_v25, %v313_v25 }
 0x10f   : > { %1207 = vmatmul.mubr.bf16.vlgmr.msra.gmra.mrb[0].mxu0 %v314_v26  ;;  %1227 = vmatmul.mubr.bf16.vlgmr.msra.gmra.mrb[0].mxu1 %v314_v26 }
 0x110   : > { %1232 = vmatprep.mubr.msk.bf16.mxu0 %vm1550_vm0, %v1549_v0  ;;  %1238 = vmatprep.mubr.msk.bf16.mxu1 %vm1550_vm0, %v1549_v0 }
 0x1e2   : > { %v413_v27 = vpop.f32.mrb[0].mxu0  ;;  %v517_v28 = vpop.f32.mrb[0].mxu1 }
 0x1e3   : > { %v1805_v29 = vpack.c.bf16 %v517_v28, %v517_v28  ;;  %v1228_v30 = vpop.f32.mrb[1].mxu1  ;;  %525 = vrot.lane.b32.xlu0 %v413_v27, %s1551_s14  ;;  %v1208_v31 = vpop.f32.mrb[1].mxu0  ;;  %v529_v40 = vmul.f32 %v528_v37, %v413_v27 }
 0x1e4   : > { %v416_v32 = vpop.f32.mrb[2].mxu0  ;;  %v520_v33 = vpop.f32.mrb[2].mxu1 }
 0x1e5   : > { %v1209_v34 = vpop.f32.mrb[3].mxu0  ;;  %v1229_v35 = vpop.f32.mrb[3].mxu1  ;;  %v608_v36 = vsel %vm606_vm1, %v1805_v29, 0 }
 0x1e6   : > { %1237 = vmatpush3.bf16.msra.mxu1 %v608_v36 }
 0x1e7   : > { %1248 = vmatprep.subr.bf16.mxu1 %v1549_v0 }
 0x255   : > { %v526_v39 = vpop.permute.xlu0 %525 }
 0x256   : > { %v531_v41 = vmul.f32 %v530_v38, %v526_v39 }
 0x258   : > { %v532_v42 = vadd.f32 %v531_v41, %v529_v40 }
 0x25a   : > { %v533_v43 = vpack.c.bf16 %v532_v42, %v532_v42  ;;  %v534_v45 = vmul.f32 0.17677669, %v532_v42 }
 0x25c   : > { %655 = vrot.lane.b32.xlu1 %v533_v43, %s1552_s12  ;;  %v546_v44 = vsel %vm541_vm2, %v533_v43, 0  ;;  %v535_v46 = vpack.c.bf16 %v534_v45, %v534_v45 }
 0x25d   : > { %1231 = vmatpush3.bf16.xpose.msra.mxu0 %v546_v44 }
 0x25e   : > { %1242 = vmatprep.subr.bf16.mxu0 %v1549_v0 }
 0x260   : > { %774 = vrot.lane.b32.xlu1 %v533_v43, %s1551_s14 }
 0x264   : > { %652 = vrot.lane.b32.xlu1 %v535_v46, %s1552_s12  ;;  %1233 = vmatmul.mubr.msk.bf16.vlgmr.msra.gmra.mrb[4].mxu0 %vm541_vm2, %v535_v46 }
 0x265   : > { %1244 = vmatprep.mubr.msk.bf16.mxu0 %vm1550_vm0, %v1549_v0 }
 0x268   : > { %772 = vrot.lane.b32.xlu1 %v535_v46, %s1551_s14 }
 0x26c   : > { %892 = vrot.lane.b32.xlu1 %v533_v43, %s1553_s20 }
 0x270   : > { %890 = vrot.lane.b32.xlu1 %v535_v46, %s1553_s20 }
 0x2ce   : > { %v656_v47 = vpop.permute.xlu1 %655 }
 0x2cf   : > { %v661_v48 = vsel %vm541_vm2, %v656_v47, 0 }
 0x2d0   : > { %1243 = vmatpush3.bf16.xpose.msra.mxu0 %v661_v48 }
 0x2d1   : > { %1254 = vmatprep.subr.bf16.mxu0 %v1549_v0 }
 0x2d2   : > { %v775_v49 = vpop.permute.xlu1 %774 }
 0x2d3   : > { %v780_v51 = vsel %vm541_vm2, %v775_v49, 0 }
 0x2d6   : > { %v653_v50 = vpop.permute.xlu1 %652 }
 0x2d7   : > { %1245 = vmatmul.mubr.msk.bf16.vlgmr.msra.gmra.mrb[8].mxu0 %vm541_vm2, %v653_v50 }
 0x2d8   : > { %1255 = vmatpush3.bf16.xpose.msra.mxu0 %v780_v51  ;;  %1256 = vmatprep.mubr.msk.bf16.mxu0 %vm1550_vm0, %v1549_v0 }
 0x2d9   : > { %1266 = vmatprep.subr.bf16.mxu0 %v1549_v0 }
 0x2da   : > { %v773_v52 = vpop.permute.xlu1 %772 }
 0x2de   : > { %v893_v53 = vpop.permute.xlu1 %892 }
 0x2df   : > { %v898_v54 = vsel %vm541_vm2, %v893_v53, 0  ;;  %1257 = vmatmul.mubr.msk.bf16.vlgmr.msra.gmra.mrb[12].mxu0 %vm541_vm2, %v773_v52 }
 0x2e0   : > { %1267 = vmatpush3.bf16.xpose.msra.mxu0 %v898_v54  ;;  %1268 = vmatprep.mubr.msk.bf16.mxu0 %vm1550_vm0, %v1549_v0 }
 0x2e2   : > { %v891_v55 = vpop.permute.xlu1 %890 }
 0x2e7   : > { %1269 = vmatmul.mubr.msk.bf16.vlgmr.msra.gmra.mrb[16].mxu0 %vm541_vm2, %v891_v55 }
 0x337   : > { %v582_v59 = vpop.f32.mrb[4].mxu0 }
 0x338   : > { %v588_v60 = vsel %vm540_vm3, %v582_v59, -1e+30  ;;  %v1234_v61 = vpop.f32.mrb[5].mxu0 }
 0x339   : > { %v585_v62 = vpop.f32.mrb[6].mxu0  ;;  %v590_v63 = vsel %vm589_vm4, %v588_v60, -inf }
 0x33a   : > { %591 = vmax.xlane.f32.xlu1 %v590_v63  ;;  %v1235_v2 = vpop.f32.mrb[7].mxu0 }
 0x3aa   : > { %v697_v3 = vpop.f32.mrb[8].mxu0 }
 0x3ab   : > { %v703_v4 = vsel %vm540_vm3, %v697_v3, -1e+30  ;;  %v1246_v5 = vpop.f32.mrb[9].mxu0 }
 0x3ac   : > { %v700_v6 = vpop.f32.mrb[10].mxu0  ;;  %v704_v7 = vsel %vm589_vm4, %v703_v4, -inf }
 0x3ad   : > { %705 = vmax.xlane.f32.xlu0 %v704_v7  ;;  %v1247_v8 = vpop.f32.mrb[11].mxu0 }
 0x3b2   : > { %v816_v9 = vpop.f32.mrb[12].mxu0 }
 0x3b3   : > { %v822_v10 = vsel %vm540_vm3, %v816_v9, -1e+30  ;;  %v1258_v11 = vpop.f32.mrb[13].mxu0 }
 0x3b4   : > { %v819_v12 = vpop.f32.mrb[14].mxu0  ;;  %v823_v13 = vsel %vm589_vm4, %v822_v10, -inf }
 0x3b5   : > { %824 = vmax.xlane.f32.xlu0 %v823_v13  ;;  %v1259_v14 = vpop.f32.mrb[15].mxu0 }
 0x3ba   : > { %v934_v15 = vpop.f32.mrb[16].mxu0 }
 0x3bb   : > { %v940_v16 = vsel %vm540_vm3, %v934_v15, -1e+30  ;;  %v1270_v17 = vpop.f32.mrb[17].mxu0 }
 0x3bc   : > { %v937_v18 = vpop.f32.mrb[18].mxu0  ;;  %v941_v19 = vsel %vm589_vm4, %v940_v16, -inf }
 0x3bd   : > { %942 = vmax.xlane.f32.xlu1 %v941_v19  ;;  %v1271_v20 = vpop.f32.mrb[19].mxu0 }
 0x3c7   : > { %v592_v21 = vpop.xlane.xlu1 %591 }
 0x3c8   : > { %v593_v22 = vsub.f32 %v588_v60, %v592_v21 }
 0x3ca   : > { %v594_v23 = vmul.f32 1.442695, %v593_v22 }
 0x3cc   : > { %1370 = vpow2.f32 %v594_v23 }
 0x3d6   : > { %v1371_v24 = vpop.eup %1370 }
 0x3d7   : > { %v596_v25 = vsel %vm589_vm4, %v1371_v24, 0.0 }
 0x3d8   : > { %597 = vadd.xlane.f32.xlu0 %v596_v25 }
 0x43a   : > { %v706_v26 = vpop.xlane.xlu0 %705 }
 0x43b   : > { %v707_v27 = vsub.f32 %v703_v4, %v706_v26 }
 0x43d   : > { %v708_v28 = vmul.f32 1.442695, %v707_v27 }
 0x43f   : > { %1372 = vpow2.f32 %v708_v28 }
 0x442   : > { %v825_v30 = vpop.xlane.xlu0 %824 }
 0x443   : > { %v826_v31 = vsub.f32 %v822_v10, %v825_v30 }
 0x445   : > { %v827_v32 = vmul.f32 1.442695, %v826_v31 }
 0x447   : > { %1374 = vpow2.f32 %v827_v32 }
 0x449   : > { %v1373_v33 = vpop.eup %1372 }
 0x44a   : > { %v710_v34 = vsel %vm589_vm4, %v1373_v33, 0.0  ;;  %v943_v38 = vpop.xlane.xlu1 %942 }
 0x44b   : > { %711 = vadd.xlane.f32.xlu1 %v710_v34  ;;  %v944_v39 = vsub.f32 %v940_v16, %v943_v38 }
 0x44d   : > { %v945_v40 = vmul.f32 1.442695, %v944_v39 }
 0x451   : > { %v1375_v35 = vpop.eup %1374 }
 0x452   : > { %v829_v36 = vsel %vm589_vm4, %v1375_v35, 0.0 }
 0x453   : > { %830 = vadd.xlane.f32.xlu0 %v829_v36 }
 0x45c   : > { %836 = vrot.lane.b32.xlu1 %v1805_v29, %s1551_s14 }
 0x465   : > { %v598_v37 = vpop.xlane.xlu0 %597 }
 0x466   : > { %1376 = vrcp.f32 %v598_v37 }
 0x467   : > { %1378 = vpow2.f32 %v945_v40 }
 0x469   : > { %718 = vrot.lane.b32.xlu0 %v1805_v29, %s1552_s12 }
 0x470   : > { %v1377_v41 = vpop.eup %1376 }
 0x471   : > { %v601_v42 = vmul.f32 %v1377_v41, %v1371_v24  ;;  %v1379_v44 = vpop.eup %1378 }
 0x472   : > { %v947_v45 = vsel %vm589_vm4, %v1379_v44, 0.0 }
 0x473   : > { %v602_v43 = vpack.c.bf16 %v601_v42, %v601_v42 }
 0x475   : > { %1239 = vmatmul.mubr.msk.bf16.vlgmr.msra.gmra.mrb[4].mxu1 %vm589_vm4, %v602_v43 }
 0x476   : > { %1250 = vmatprep.mubr.msk.bf16.mxu1 %vm1550_vm0, %v1549_v0 }
 0x480   : > { %948 = vadd.xlane.f32.xlu1 %v947_v45 }
 0x491   : > { %954 = vrot.lane.b32.xlu1 %v1805_v29, %s1553_s20 }
 0x4d8   : > { %v712_v46 = vpop.xlane.xlu1 %711 }
 0x4d9   : > { %1380 = vrcp.f32 %v712_v46 }
 0x4dc   : > { %v837_v52 = vpop.permute.xlu1 %836 }
 0x4dd   : > { %v842_v54 = vsel %vm606_vm1, %v837_v52, 0 }
 0x4e0   : > { %v831_v47 = vpop.xlane.xlu0 %830 }
 0x4e1   : > { %1382 = vrcp.f32 %v831_v47 }
 0x4e3   : > { %v1381_v48 = vpop.eup %1380 }
 0x4e4   : > { %v715_v49 = vmul.f32 %v1381_v48, %v1373_v33  ;;  %v719_v50 = vpop.permute.xlu0 %718 }
 0x4e5   : > { %v724_v51 = vsel %vm606_vm1, %v719_v50, 0 }
 0x4e6   : > { %1249 = vmatpush3.bf16.msra.mxu1 %v724_v51  ;;  %v716_v53 = vpack.c.bf16 %v715_v49, %v715_v49 }
 0x4e7   : > { %1260 = vmatprep.subr.bf16.mxu1 %v1549_v0 }
 0x4e9   : > { %1251 = vmatmul.mubr.msk.bf16.vlgmr.msra.gmra.mrb[8].mxu1 %vm589_vm4, %v716_v53 }
 0x4ea   : > { %1261 = vmatpush3.bf16.msra.mxu1 %v842_v54  ;;  %1262 = vmatprep.mubr.msk.bf16.mxu1 %vm1550_vm0, %v1549_v0 }
 0x4eb   : > { %v1383_v29 = vpop.eup %1382  ;;  %1272 = vmatprep.subr.bf16.mxu1 %v1549_v0 }
 0x4ec   : > { %v834_v55 = vmul.f32 %v1383_v29, %v1375_v35 }
 0x4ee   : > { %v835_v56 = vpack.c.bf16 %v834_v55, %v834_v55 }
 0x4f1   : > { %1263 = vmatmul.mubr.msk.bf16.vlgmr.msra.gmra.mrb[12].mxu1 %vm589_vm4, %v835_v56 }
 0x4f2   : > { %1274 = vmatprep.mubr.msk.bf16.mxu1 %vm1550_vm0, %v1549_v0 }
 0x50d   : > { %v949_v57 = vpop.xlane.xlu1 %948 }
 0x50e   : > { %1384 = vrcp.f32 %v949_v57 }
 0x511   : > { %v955_v58 = vpop.permute.xlu1 %954 }
 0x512   : > { %v960_v59 = vsel %vm606_vm1, %v955_v58, 0 }
 0x513   : > { %1273 = vmatpush3.bf16.msra.mxu1 %v960_v59 }
 0x518   : > { %v1385_v60 = vpop.eup %1384 }
 0x519   : > { %v952_v61 = vmul.f32 %v1385_v60, %v1379_v44 }
 0x51b   : > { %v953_v62 = vpack.c.bf16 %v952_v61, %v952_v61 }
 0x51d   : > { %1275 = vmatmul.mubr.msk.bf16.vlgmr.msra.gmra.mrb[16].mxu1 %vm589_vm4, %v953_v62 }
 0x548   : > { %v644_v63 = vpop.f32.mrb[4].mxu1 }
 0x549   : > { %650 = vst.msk [vmem:[#allocation2] sm:$0xff] %vm541_vm2, %v644_v63  ;;  %v1240_v2 = vpop.f32.mrb[5].mxu1 }
 0x54a   : > { %v647_v3 = vpop.f32.mrb[6].mxu1 }
 0x54b   : > { %v1241_v4 = vpop.f32.mrb[7].mxu1 }
 0x5bc   : > { %v760_v5 = vpop.f32.mrb[8].mxu1 }
 0x5bd   : > { %767 = vrot.lane.b32.xlu0 %v760_v5, %s1553_s20  ;;  %v1252_v0 = vpop.f32.mrb[9].mxu1 }
 0x5be   : > { %v763_v6 = vpop.f32.mrb[10].mxu1 }
 0x5bf   : > { %v1253_v7 = vpop.f32.mrb[11].mxu1 }
 0x5c4   : > { %v878_v8 = vpop.f32.mrb[12].mxu1 }
 0x5c5   : > { %885 = vrot.lane.b32.xlu1 %v878_v8, %s1551_s14  ;;  %v1264_v9 = vpop.f32.mrb[13].mxu1  ;;  %s1013_s14 = scalar_lea.sflag [#allocation5], %s1759_s18 }
 0x5c6   : > { %v881_v10 = vpop.f32.mrb[14].mxu1 }
 0x5c7   : > { %v1265_v11 = vpop.f32.mrb[15].mxu1 }
 0x5f0   : > { %v996_v12 = vpop.f32.mrb[16].mxu1 }
 0x5f1   : > { %1003 = vrot.lane.b32.xlu0 %v996_v12, %s1552_s12  ;;  %v1276_v13 = vpop.f32.mrb[17].mxu1 }
 0x5f2   : > { %v999_v14 = vpop.f32.mrb[18].mxu1 }
 0x5f3   : > { %v1277_v15 = vpop.f32.mrb[19].mxu1 }
 0x62f   : > { %v768_v16 = vpop.permute.xlu0 %767 }
 0x630   : > { %771 = vst.msk [vmem:[#allocation2] sm:$0xff] %vm770_vm5, %v768_v16 }
 0x637   : > { %v886_v17 = vpop.permute.xlu1 %885 }
 0x638   : > { %889 = vst.msk [vmem:[#allocation2] sm:$0xff] %vm888_vm6, %v886_v17 }
 0x663   : > { %v1004_v18 = vpop.permute.xlu0 %1003 }
 0x664   : > { %1007 = vst.msk [vmem:[#allocation2] sm:$0xff] %vm1006_vm7, %v1004_v18 }
 0x66b   : > { %v1008_v19 = vld [vmem:[#allocation2] sm:$0xff] }
 0x66c   : > { %v1009_v20 = vadd.f32 %v1008_v19, %v1773_v1 }
 0x66e   : > { %v1010_v21 = vpack.c.bf16 %v1009_v20, %v1009_v20 }
 0x670   : > { %1011 = vst [vmem:[%s295_s30] sm:$0xf] %v1010_v21 }
 0x671   : > { %1485 = shalt.err (!%p1482_p2)
}
 0x672   : > { %s1486_s18 = scalar_lea.hbm %s1883_s29, 64  ;;  %s1490_s20 = scalar_lea.hbm %s1933_s6, 128 }
 0x673   : > { %p1487_p13 = scmp.ne.s32.totalorder %s1883_s29, %s1486_s18  ;;  %p1491_p4 = scmp.lt.u32.totalorder %s1883_s29, %s1933_s6 }
 0x674   : > { %p1492_p5 = scmp.lt.u32.totalorder %s1490_s20, %s1486_s18  ;;  %p1494_p8 = scmp.lt.u32.totalorder %s1486_s18, %s1883_s29 }
 0x675   : > { %p1488_p6 = pnand %p1487_p13, %p1947_p0 }
 0x676   : > { %p1493_p11 = por %p1492_p5, %p1491_p4 }
 0x677   : > { %p1489_p10 = pneg %p1488_p6 }
 0x678   : > { %p1495_p1 = por %p1494_p8, %p1493_p11 }
 0x67a   : > { %p1496_p3 = pnand %p1495_p1, %p1489_p10 }
 0x67c   : > { %1499 = shalt.err (!%p1496_p3)
}
 0x67d   : > { %1288 = dma.vmem_to_hbm [thread:$0]  (%p1947_p0), %s1885_s13, 64, %s1883_s29, %s1013_s14  }
 0x67e PF: > { %s1038_s30 = sand.u32 1, %s1530_s21   ;;  %p1948_p7 = scmp.ne.s32.totalorder %s1938_s28, 0 }
 0x67f   : > { %p1949_p9 = scmp.ge.s32.totalorder %s1542_s24, 2  ;;  %s1039_s10 = scalar_lea.sflag [#allocation5], %s1038_s30 }
 0x681   : > { %p1302_p12 = pnand %p1949_p9, %p1948_p7 }
 0x683   : > { %1525 = dma.done.wait (!%p1302_p12), %s1039_s10, 64  }
 0x684   : > { %1527 = vsyncadd (!%p1302_p12), %s1039_s10, 4294967232  ;;  %p20_p2 = scmp.ge.s32.totalorder %s1700_s26, 4   ;;  %s1950_s21 = smov %s1534_s22 }
 0x685   : > { %s1951_s22 = smov %s1538_s23  ;;  %s1952_s23 = smov %s1716_s11 }
 0x686   : > { %s1953_s24 = smov %s1700_s26  ;;  %22 = sbr.rel (!%p20_p2) target bundleno = 6 (0x6), region = 97 }
 0x68d   :  { %1044 = vsyncpa [#allocation4], 1 }
 0x68e   :  { %1046 = vsyncpa [#allocation4 + $0x1], 1 }
 0x68f   :  { %1047 = vsyncpa [#allocation7], 1 }
 0x690   :  { %1048 = vsyncpa [#allocation5], 1 }
 0x691   :  { %1050 = vsyncpa [#allocation5 + $0x1], 1 }

</bundles_post_ra>
